<compile_context>
chip_gen: v7x
topology: tpu7x:2x2x1
jax: 0.10.0
libtpu: 0.0.40
codegen_flags: <defaults>
</compile_context>

<pallas_src>
import jax
import jax.numpy as jnp
from jax import lax
from jax.experimental import pallas as pl
from jax.experimental.pallas import tpu as pltpu
import numpy as np


def downsample_conv_kernel(xm_ref, xh_ref, w_ref, b_ref, o_ref):
    # xm_ref: (TH, Wi, 4C)  s2d rows [i*TH, (i+1)*TH) of this image
    # xh_ref: (1,  Wi, 4C)  halo: s2d row (i+1)*TH  (the all-zero pad row for the last tile)
    # w_ref : (9C, C)       packed nonzero-tap weights (bf16), layout below
    # b_ref : (1, C)        f32 bias
    # o_ref : (TH*Wo, C)    output pixels of this row tile, channels last
    TH, Wi, K4 = xm_ref.shape
    C = K4 // 4
    Wo = Wi - 1
    M = TH * Wo
    f32 = jnp.float32

    x = xm_ref[...]                                            # (TH, Wi, 4C)

    # s2d feature layout: feature (a*2 + b)*C + ch  <=>  padded[2r + a, 2c + b, ch].
    # Rows "oy+1" (the ky==2 taps) only need the a==0 half ([0:2C]) of the next
    # s2d row: build them from this tile's rows 1.. plus the 1-row halo.
    if TH > 1:
        xn = jnp.concatenate([x[1:, :, : 2 * C], xh_ref[:, :, : 2 * C]], axis=0)
    else:
        xn = xh_ref[:, :, : 2 * C]                             # (TH, Wi, 2C)

    # 5 accumulating MXU matmuls over the 9 nonzero taps, f32 accumulation,
    # native MXU precision (bf16 operands).
    # window (dy=0, dx=0): taps ky,kx in {0,1}^2                (K = 4C)
    acc = jnp.dot(x[:, :Wo, :].reshape(M, 4 * C),
                  w_ref[0:4 * C, :], preferred_element_type=f32)
    # window (dy=0, dx=1): taps (ky=0,kx=2) and (ky=1,kx=2)     (K = C each)
    acc += jnp.dot(x[:, 1:, 0:C].reshape(M, C),
                   w_ref[4 * C:5 * C, :], preferred_element_type=f32)
    acc += jnp.dot(x[:, 1:, 2 * C:3 * C].reshape(M, C),
                   w_ref[5 * C:6 * C, :], preferred_element_type=f32)
    # window (dy=1, dx=0): taps ky=2, kx in {0,1}               (K = 2C)
    acc += jnp.dot(xn[:, :Wo, :].reshape(M, 2 * C),
                   w_ref[6 * C:8 * C, :], preferred_element_type=f32)
    # window (dy=1, dx=1): tap (ky=2, kx=2)                     (K = C)
    acc += jnp.dot(xn[:, 1:, 0:C].reshape(M, C),
                   w_ref[8 * C:9 * C, :], preferred_element_type=f32)

    acc += b_ref[...].astype(f32)
    o_ref[...] = acc.astype(o_ref.dtype)


def _pick_block_h(Ho, Wo, Wi, K4, itemsize, budget_bytes=8 << 20):
    """Largest TH with TH | Ho, input block (TH, Wi, 4C) within `budget_bytes`
    (double-buffered tiles then stay well under v7x's 64 MiB VMEM), and TH*Wo a
    multiple of 8 (sublane-aligned output block)."""
    row_bytes = Wi * K4 * itemsize
    th_cap = int(max(1, min(Ho, budget_bytes // max(row_bytes, 1))))
    for th in range(th_cap, 0, -1):
        if Ho % th == 0 and (th == Ho or (th * Wo) % 8 == 0):
            return th
    return Ho


def downsample(x_nchw, weight_oihw, bias, *, block_h=None,
               compute_dtype=jnp.bfloat16):
    """Forward of Downsample: pad (0,1,0,1) with zeros + Conv2d(C, C, k=3, s=2, p=0)."""
    N, C, H, W = x_nchw.shape
    Ho = (H + 1 - 3) // 2 + 1
    Wo = (W + 1 - 3) // 2 + 1
    Hi, Wi = Ho + 1, Wo + 1          # space-to-depth spatial dims
    K4 = 4 * C

    # ---- wrapper layout glue (fused by XLA into one/two copies): ----
    # NCHW -> NHWC, zero pad up to (2*Hi, 2*Wi), space-to-depth x2, bf16 cast.
    # The extra zero row/col beyond PyTorch's (0,1,0,1) pad is only ever read
    # through the a==1 / b==1 halves that no nonzero tap touches.
    x = jnp.transpose(x_nchw, (0, 2, 3, 1)).astype(compute_dtype)
    x = jnp.pad(x, ((0, 0), (0, 2 * Hi - H), (0, 2 * Wi - W), (0, 0)))
    xs = (x.reshape(N, Hi, 2, Wi, 2, C)
           .transpose(0, 1, 3, 2, 4, 5)
           .reshape(N, Hi, Wi, K4))                 # feature = (a*2+b)*C + ch

    # ---- pack only the 9 nonzero taps into one (9C, C) weight matrix ----
    # offsets: [0,4C) = taps (ky,kx) in {0,1}^2 ordered (ky*2+kx)*C+i,
    #          [4C,5C) = (0,2), [5C,6C) = (1,2), [6C,8C) = (2,kx) kx*C+i, [8C,9C) = (2,2)
    w = jnp.transpose(weight_oihw, (2, 3, 1, 0))    # (ky, kx, I, O)
    w9 = jnp.concatenate([
        w[:2, :2].reshape(4 * C, C),
        w[0, 2],
        w[1, 2],
        w[2, :2].reshape(2 * C, C),
        w[2, 2],
    ], axis=0).astype(compute_dtype)                # (9C, C), cast once
    b2 = bias.reshape(1, C).astype(jnp.float32)

    # ---- row tiling ----
    if block_h is None:
        block_h = _pick_block_h(Ho, Wo, Wi, K4, jnp.dtype(compute_dtype).itemsize)
    TH = int(block_h)
    if Ho % TH != 0:
        raise ValueError(f"block_h={TH} must divide Ho={Ho}")
    n_row_tiles = Ho // TH

    flops = 2 * 9 * C * C * N * Ho * Wo
    bytes_accessed = (xs.size * xs.dtype.itemsize
                      + w9.size * w9.dtype.itemsize
                      + N * Ho * Wo * C * jnp.dtype(x_nchw.dtype).itemsize)

    out = pl.pallas_call(
        downsample_conv_kernel,
        out_shape=jax.ShapeDtypeStruct((N, Ho * Wo, C), x_nchw.dtype),
        grid=(N, n_row_tiles),
        in_specs=[
            # main row tile: s2d rows [i*TH, (i+1)*TH)
            pl.BlockSpec((None, TH, Wi, K4), lambda n, i: (n, i, 0, 0)),
            # 1-row halo: s2d row (i+1)*TH (block size 1 => block idx == element idx)
            pl.BlockSpec((None, 1, Wi, K4), lambda n, i: (n, (i + 1) * TH, 0, 0)),
            # packed weights / bias: constant index_map -> VMEM resident across grid
            pl.BlockSpec((9 * C, C), lambda n, i: (0, 0)),
            pl.BlockSpec((1, C), lambda n, i: (0, 0)),
        ],
        out_specs=pl.BlockSpec((None, TH * Wo, C), lambda n, i: (n, i, 0)),
        compiler_params=pltpu.CompilerParams(
            # both axes parallel: megacore sharding works even for N == 1 (v7x)
            dimension_semantics=("parallel", "parallel"),
            vmem_limit_bytes=48 * 1024 * 1024,
        ),
        cost_estimate=pl.CostEstimate(flops=flops, transcendentals=0,
                                      bytes_accessed=bytes_accessed),
    )(xs, xs, w9, b2)

    # back to NCHW (module interface)
    return out.reshape(N, Ho, Wo, C).transpose(0, 3, 1, 2)


if __name__ == "__main__":
    key = jax.random.PRNGKey(0)
    k_x, k_w, k_b = jax.random.split(key, 3)

    N, C, H, W = 2, 4, 16, 16
    x = jax.random.normal(k_x, (N, C, H, W), dtype=jnp.float32)

    # deterministic synthetic parameters (nn.Conv2d(C, C, 3) shapes)
    fan_in = C * 3 * 3
    bound = 1.0 / np.sqrt(fan_in)
    weight = jax.random.uniform(k_w, (C, C, 3, 3), dtype=jnp.float32,
                                minval=-bound, maxval=bound)
    bias = jax.random.uniform(k_b, (C,), dtype=jnp.float32,
                              minval=-bound, maxval=bound)

    # reference: pad (0,1,0,1) + conv (stride 2, VALID) + bias, exact f32
    x_pad = jnp.pad(x, ((0, 0), (0, 0), (0, 1), (0, 1)))
    ref = lax.conv_general_dilated(
        x_pad, weight, window_strides=(2, 2), padding="VALID",
        dimension_numbers=("NCHW", "OIHW", "NCHW"),
        precision=jax.lax.Precision.HIGHEST)
    ref = ref + bias.reshape(1, C, 1, 1)
    ref = jax.block_until_ready(ref)

    # explicit small row tile: exercises the multi-tile + halo path (2 row tiles)
    out_tiled = jax.block_until_ready(downsample(x, weight, bias, block_h=4))
    # auto-chosen tile (single tile at this tiny size)
    out_auto = jax.block_until_ready(downsample(x, weight, bias))

    assert out_tiled.shape == (N, C, H // 2, W // 2), out_tiled.shape
    assert out_auto.shape == (N, C, H // 2, W // 2), out_auto.shape
    # bf16 operands + f32 accumulation -> bf16-level tolerance vs exact f32 ref
    np.testing.assert_allclose(np.asarray(out_tiled), np.asarray(ref),
                               rtol=2e-2, atol=2e-2)
    np.testing.assert_allclose(np.asarray(out_auto), np.asarray(ref),
                               rtol=2e-2, atol=2e-2)

    print("KERNEL_OK")
</pallas_src>

<mosaic_0001>
module attributes {stable_mosaic.version = 11 : i64} {
  func.func @downsample_conv_kernel(%arg0: i32, %arg1: i32, %arg2: memref<1x4x9x16xbf16, #tpu.memory_space<vmem>>, %arg3: memref<1x1x9x16xbf16, #tpu.memory_space<vmem>>, %arg4: memref<36x4xbf16, #tpu.memory_space<vmem>>, %arg5: memref<1x4xf32, #tpu.memory_space<vmem>>, %arg6: memref<1x32x4xf32, #tpu.memory_space<vmem>>) attributes {dimension_semantics = [#tpu.dimension_semantics<parallel>, #tpu.dimension_semantics<parallel>], iteration_bounds = array<i64: 2, 2>, scalar_prefetch = 0 : i64, scratch_operands = 0 : i64, tpu.core_type = #tpu.core_type<tc>, window_params = [{transform_indices = @transform_0, window_bounds = array<i64: 1, 4, 9, 16>}, {transform_indices = @transform_1, window_bounds = array<i64: 1, 1, 9, 16>}, {pipeline_mode = #tpu.pipeline_mode<synchronous>, transform_indices = @transform_2, window_bounds = array<i64: 36, 4>}, {pipeline_mode = #tpu.pipeline_mode<synchronous>, transform_indices = @transform_3, window_bounds = array<i64: 1, 4>}, {transform_indices = @transform_4, window_bounds = array<i64: 1, 32, 4>}]} {
    %c0 = arith.constant 0 : index
    %c0_0 = arith.constant 0 : index
    %c0_1 = arith.constant 0 : index
    %c0_2 = arith.constant 0 : index
    %0 = vector.load %arg2[%c0, %c0_0, %c0_1, %c0_2] : memref<1x4x9x16xbf16, #tpu.memory_space<vmem>>, vector<1x4x9x16xbf16>
    %1 = vector.shape_cast %0 : vector<1x4x9x16xbf16> to vector<4x9x16xbf16>
    %2 = vector.extract_strided_slice %1 {offsets = [1, 0, 0], sizes = [3, 9, 8], strides = [1, 1, 1]} : vector<4x9x16xbf16> to vector<3x9x8xbf16>
    %c0_3 = arith.constant 0 : index
    %c0_4 = arith.constant 0 : index
    %c0_5 = arith.constant 0 : index
    %c0_6 = arith.constant 0 : index
    %3 = vector.load %arg3[%c0_3, %c0_4, %c0_5, %c0_6] : memref<1x1x9x16xbf16, #tpu.memory_space<vmem>>, vector<1x1x9x8xbf16>
    %4 = vector.shape_cast %3 : vector<1x1x9x8xbf16> to vector<1x9x8xbf16>
    %5 = tpu.concatenate %2, %4 in 0 : vector<3x9x8xbf16>, vector<1x9x8xbf16> -> vector<4x9x8xbf16>
    %6 = vector.extract_strided_slice %1 {offsets = [0, 0, 0], sizes = [4, 8, 16], strides = [1, 1, 1]} : vector<4x9x16xbf16> to vector<4x8x16xbf16>
    %7 = vector.shape_cast %6 : vector<4x8x16xbf16> to vector<32x16xbf16>
    %c0_7 = arith.constant 0 : index
    %c0_8 = arith.constant 0 : index
    %8 = vector.load %arg4[%c0_7, %c0_8] : memref<36x4xbf16, #tpu.memory_space<vmem>>, vector<16x4xbf16>
    %cst = arith.constant dense<0.000000e+00> : vector<32x4xf32>
    %9 = tpu.matmul %7, %8, %cst {dimension_numbers = #tpu.dot_dimension_numbers<[1], [0], [0], [1], [0, 0, 1, 1], [], []>} : vector<32x16xbf16>, vector<16x4xbf16>, vector<32x4xf32> -> vector<32x4xf32>
    %10 = vector.extract_strided_slice %1 {offsets = [0, 1, 0], sizes = [4, 8, 4], strides = [1, 1, 1]} : vector<4x9x16xbf16> to vector<4x8x4xbf16>
    %11 = vector.shape_cast %10 : vector<4x8x4xbf16> to vector<32x4xbf16>
    %c16 = arith.constant 16 : index
    %c0_9 = arith.constant 0 : index
    %12 = vector.load %arg4[%c16, %c0_9] : memref<36x4xbf16, #tpu.memory_space<vmem>>, vector<4x4xbf16>
    %cst_10 = arith.constant dense<0.000000e+00> : vector<32x4xf32>
    %13 = tpu.matmul %11, %12, %cst_10 {dimension_numbers = #tpu.dot_dimension_numbers<[1], [0], [0], [1], [0, 0, 1, 1], [], []>} : vector<32x4xbf16>, vector<4x4xbf16>, vector<32x4xf32> -> vector<32x4xf32>
    %14 = arith.addf %9, %13 : vector<32x4xf32>
    %15 = vector.extract_strided_slice %1 {offsets = [0, 1, 8], sizes = [4, 8, 4], strides = [1, 1, 1]} : vector<4x9x16xbf16> to vector<4x8x4xbf16>
    %16 = vector.shape_cast %15 : vector<4x8x4xbf16> to vector<32x4xbf16>
    %c20 = arith.constant 20 : index
    %c0_11 = arith.constant 0 : index
    %17 = vector.load %arg4[%c20, %c0_11] : memref<36x4xbf16, #tpu.memory_space<vmem>>, vector<4x4xbf16>
    %cst_12 = arith.constant dense<0.000000e+00> : vector<32x4xf32>
    %18 = tpu.matmul %16, %17, %cst_12 {dimension_numbers = #tpu.dot_dimension_numbers<[1], [0], [0], [1], [0, 0, 1, 1], [], []>} : vector<32x4xbf16>, vector<4x4xbf16>, vector<32x4xf32> -> vector<32x4xf32>
    %19 = arith.addf %14, %18 : vector<32x4xf32>
    %20 = vector.extract_strided_slice %5 {offsets = [0, 0, 0], sizes = [4, 8, 8], strides = [1, 1, 1]} : vector<4x9x8xbf16> to vector<4x8x8xbf16>
    %21 = vector.shape_cast %20 : vector<4x8x8xbf16> to vector<32x8xbf16>
    %c24 = arith.constant 24 : index
    %c0_13 = arith.constant 0 : index
    %22 = vector.load %arg4[%c24, %c0_13] : memref<36x4xbf16, #tpu.memory_space<vmem>>, vector<8x4xbf16>
    %cst_14 = arith.constant dense<0.000000e+00> : vector<32x4xf32>
    %23 = tpu.matmul %21, %22, %cst_14 {dimension_numbers = #tpu.dot_dimension_numbers<[1], [0], [0], [1], [0, 0, 1, 1], [], []>} : vector<32x8xbf16>, vector<8x4xbf16>, vector<32x4xf32> -> vector<32x4xf32>
    %24 = arith.addf %19, %23 : vector<32x4xf32>
    %25 = vector.extract_strided_slice %5 {offsets = [0, 1, 0], sizes = [4, 8, 4], strides = [1, 1, 1]} : vector<4x9x8xbf16> to vector<4x8x4xbf16>
    %26 = vector.shape_cast %25 : vector<4x8x4xbf16> to vector<32x4xbf16>
    %c32 = arith.constant 32 : index
    %c0_15 = arith.constant 0 : index
    %27 = vector.load %arg4[%c32, %c0_15] : memref<36x4xbf16, #tpu.memory_space<vmem>>, vector<4x4xbf16>
    %cst_16 = arith.constant dense<0.000000e+00> : vector<32x4xf32>
    %28 = tpu.matmul %26, %27, %cst_16 {dimension_numbers = #tpu.dot_dimension_numbers<[1], [0], [0], [1], [0, 0, 1, 1], [], []>} : vector<32x4xbf16>, vector<4x4xbf16>, vector<32x4xf32> -> vector<32x4xf32>
    %29 = arith.addf %24, %28 : vector<32x4xf32>
    %c0_17 = arith.constant 0 : index
    %c0_18 = arith.constant 0 : index
    %30 = vector.load %arg5[%c0_17, %c0_18] : memref<1x4xf32, #tpu.memory_space<vmem>>, vector<1x4xf32>
    %31 = vector.broadcast %30 : vector<1x4xf32> to vector<32x4xf32>
    %32 = arith.addf %29, %31 : vector<32x4xf32>
    %c0_19 = arith.constant 0 : index
    %c0_20 = arith.constant 0 : index
    %c0_21 = arith.constant 0 : index
    %33 = vector.load %arg6[%c0_19, %c0_20, %c0_21] : memref<1x32x4xf32, #tpu.memory_space<vmem>>, vector<1x32x4xf32>
    %34 = vector.shape_cast %33 : vector<1x32x4xf32> to vector<32x4xf32>
    %35 = vector.shape_cast %32 : vector<32x4xf32> to vector<1x32x4xf32>
    tpu.vector_store %arg6[%c0_19, %c0_20, %c0_21], %35 {strides = array<i32>} : memref<1x32x4xf32, #tpu.memory_space<vmem>>, vector<1x32x4xf32>,
    return
  }
  func.func @transform_0(%arg0: i32, %arg1: i32) -> (i32, i32, i32, i32) {
    %c0_i32 = arith.constant 0 : i32
    %c0_i32_0 = arith.constant 0 : i32
    %c0_i32_1 = arith.constant 0 : i32
    return %arg0, %arg1, %c0_i32, %c0_i32_0 : i32, i32, i32, i32
  }
  func.func @transform_1(%arg0: i32, %arg1: i32) -> (i32, i32, i32, i32) {
    %c1_i32 = arith.constant 1 : i32
    %0 = arith.addi %arg1, %c1_i32 : i32
    %c4_i32 = arith.constant 4 : i32
    %1 = arith.muli %0, %c4_i32 : i32
    %c0_i32 = arith.constant 0 : i32
    %c0_i32_0 = arith.constant 0 : i32
    %c0_i32_1 = arith.constant 0 : i32
    return %arg0, %1, %c0_i32, %c0_i32_0 : i32, i32, i32, i32
  }
  func.func @transform_2(%arg0: i32, %arg1: i32) -> (i32, i32) {
    %c0_i32 = arith.constant 0 : i32
    %c0_i32_0 = arith.constant 0 : i32
    %c0_i32_1 = arith.constant 0 : i32
    return %c0_i32, %c0_i32_0 : i32, i32
  }
  func.func @transform_3(%arg0: i32, %arg1: i32) -> (i32, i32) {
    %c0_i32 = arith.constant 0 : i32
    %c0_i32_0 = arith.constant 0 : i32
    %c0_i32_1 = arith.constant 0 : i32
    return %c0_i32, %c0_i32_0 : i32, i32
  }
  func.func @transform_4(%arg0: i32, %arg1: i32) -> (i32, i32, i32) {
    %c0_i32 = arith.constant 0 : i32
    %c0_i32_0 = arith.constant 0 : i32
    return %arg0, %arg1, %c0_i32 : i32, i32, i32
  }
}

</mosaic_0001>

<bundles_post_ra>
// kernel: tpu_custom_call.1
= control target key start
LH: loop header
LB: loop body
LE: loop exit
PB: predicated region body
PF: predicated region fallthrough
CT: control target
= control target key end

     0   :  { %s1096_s15 = smov 0   ;;  %s1098_s16 = smov 0   ;;  %s1251_s0 = inlined_call_operand.vmem [shape: bf16[2,9,9,16], index: 0, kind: input, shape index: {}]   ;;  %s1252_s1 = inlined_call_operand.vmem [shape: bf16[2,9,9,16], index: 1, kind: input, shape index: {}]   ;;  %s1253_s2 = inlined_call_operand.vmem [shape: bf16[36,4], index: 2, kind: input, shape index: {}]   ;;  %s1254_s3 = inlined_call_operand.vmem [shape: f32[1,4], index: 3, kind: input, shape index: {}]   ;;  %s1255_s4 = inlined_call_operand.vmem [shape: f32[2,64,4], index: 4, kind: output, shape index: {}]  }
   0x1   :  { %s1100_s17 = smov 0   ;;  %s1102_s18 = smov 0  }
   0x2   :  { %s1104_s19 = smov 0  }
   0x3 LB: > { %s23_s20 = sadd.s32 1, %s1060_s17  ;;  %s26_s21 = sadd.s32 1, %s1064_s18  ;;  %s1068_s19 = sphi %s1104_s19, %s14_s19   ;;  %s1064_s18 = sphi %s1102_s18, %s1262_s18   ;;  %s1060_s17 = sphi %s1100_s17, %s1261_s17   ;;  %s1056_s16 = sphi %s1098_s16, %s1260_s16   ;;  %s1052_s15 = sphi %s1096_s15, %s1259_s15  }
   0x4   : > { %p24_p0 = scmp.ge.s32.totalorder %s23_s20, 2  ;;  %p879_p1 = scmp.ge.s32.totalorder %s1068_s19, 1 }
   0x5   : > { %p218_p2 = scmp.lt.s32.totalorder %s1068_s19, 5 }
   0x6   : > { %s1264_s20 = smov (%p24_p0, %s23_s20), 0  ;;  %s1266_s21 = smov (!%p24_p0, %s26_s21), %s1064_s18 }
   0x7   : > { %p219_p3 = pnand %p879_p1, %p218_p2  ;;  %p28_p4 = scmp.ge.s32.totalorder %s1266_s21, 2 }
   0x8   : > { %s1126_s22 = sshll.u32 (!%p219_p3), %s1052_s15, 2  ;;  %p275_p5 = scmp.lt.s32.totalorder (!%p219_p3), %s1056_s16, 1  ;;  %v385_v0 = vld [vmem:[%s1253_s2 + $0x8] sm:$0x3] (!%p219_p3)  ;;  %vm399_vm0 = vcmask (!%p219_p3), 1041408   ;;  %v1026_v36 = vld [vmem:[%s1253_s2] sm:$0xff] (!%p219_p3)  }
   0x9   : > { %s1268_s21 = smov (%p28_p4, %s1266_s21), 0  ;;  %222 = sbr.rel (%p219_p3) target bundleno = 400 (0x190), region = 36 }
   0xa   : > { %p277_p6 = scmp.lt.s32.totalorder (!%p219_p3), %s1126_s22, 8  ;;  %979 = vmatprep.subr.msk.bf16.mxu1 (!%p219_p3), %vm399_vm0, %v385_v0  ;;  %v401_v1 = vsel (!%p219_p3), %vm399_vm0, %v385_v0, 0  ;;  %v1140_v2 = vld [vmem:[%s1253_s2 + $0x8] ss:$0 sps:$4 sm:$0xcc] (!%p219_p3)   ;;  %s917_s29 = sadd.s32 (!%p219_p3), 4, %s1126_s22 }
   0xb   : > { %934 = vmatpush3.bf16.msra.mxu1 (!%p219_p3), %v401_v1  ;;  %v532_v3 = vrot.slane (!%p219_p3), %v1140_v2, 2  ;;  %p1147_p7 = scmp.lt.s32.totalorder (!%p219_p3), %s917_s29, 8  ;;  %vm326_vm1 = vsmask.f32 (!%p219_p3), 3328  ;;  %vm327_vm2 = vsmask.f32 (!%p219_p3), 7440 }
   0xc   : > { %vm1179_vm3 = vmor (!%p219_p3), %vm326_vm1, %vm327_vm2  ;;  %vm392_vm4 = vcmask (!%p219_p3), 31744   ;;  %939 = vmatprep.subr.bf16.mxu1 (!%p219_p3), %v1026_v36  ;;  %v595_v53 = vld [vmem:[%s1253_s2 + $0xc] sm:$0xf] (!%p219_p3)  ;;  %vm607_vm5 = vcmask (!%p219_p3), 1043456   ;;  %vm468_vm6 = vcmask (!%p219_p3), 130048   ;;  %vm600_vm7 = vcmask (!%p219_p3), 64512  }
   0xd   : > { %980 = vmatprep.subr.msk.bf16.mxu0 (!%p219_p3), %vm399_vm0, %v532_v3  ;;  %v540_v59 = vsel (!%p219_p3), %vm399_vm0, %v532_v3, 0  ;;  %v609_v62 = vsel (!%p219_p3), %vm607_vm5, %v595_v53, 0  ;;  %p306_p8 = scmp.lt.s32.totalorder (!%p219_p3), %s1126_s22, 7 }
   0xe   : > { %946 = vmatpush3.bf16.msra.mxu0 (!%p219_p3), %v540_v59 }
   0xf   : > { %981 = vmatprep.subr.msk.bf16.mxu0 (!%p219_p3), %vm607_vm5, %v595_v53 }
  0x10   : > { %s1270_s16 = smov (!%p275_p5, %s1056_s16), 1  ;;  %s1272_s29 = smov (!%p1147_p7, %s917_s29), 8 }
  0x11   : > { %s278_s25 = scalar_select %p277_p6, %s1126_s22, 8 }
  0x12   : > { %s983_s28 = smul.u32 18, %s1270_s16  ;;  %s884_s11 = sshll.u32 %s1272_s29, 1 }
  0x13   : > { %s881_s30 = sshll.u32 %s278_s25, 1  ;;  %s1274_s22 = smov (!%p306_p8, %s1126_s22), 7 }
  0x14   : > { %s281_s5 = sadd.s32 %s983_s28, %s881_s30  ;;  %s298_s12 = sadd.s32 %s983_s28, %s884_s11 }
  0x15   : > { %s882_s6 = sshll.u32 %s281_s5, 2  ;;  %s885_s13 = sshll.u32 %s298_s12, 2 }
  0x16   : > { %s283_s10 = scalar_lea.vmem %s1251_s0, %s882_s6  ;;  %s300_s23 = scalar_lea.vmem %s1252_s1, %s885_s13 }
  0x17   : > { %v1157_v4 = vld [vmem:[%s283_s10] sm:$0xf]  ;;  %v315_v5 = vld [vmem:[%s283_s10 + $0x4] sm:$0x1]  ;;  %v1159_v6 = vld [vmem:[%s283_s10 + $0x8] sm:$0xf] }
  0x18   : > { %v317_v7 = vld [vmem:[%s283_s10 + $0xc] sm:$0x1]  ;;  %v1161_v8 = vld [vmem:[%s283_s10 + $0x10] sm:$0xf]  ;;  %v319_v9 = vld [vmem:[%s283_s10 + $0x14] sm:$0x1]  ;;  %v893_v1 = vcombine.low %v1157_v4, %v1159_v6 }
  0x19   : > { %v330_v10 = vshrl.u32 %v1157_v4, 16  ;;  %v333_v11 = vshll.u32 %v1157_v4, 16  ;;  %v339_v12 = vshll.u32 %v315_v5, 16  ;;  %v344_v13 = vshrl.u32 %v1159_v6, 16  ;;  %v1171_v18 = vld [vmem:[%s283_s10 + $0x18] sm:$0xf] }
  0x1a   : > { %v347_v14 = vshll.u32 %v1159_v6, 16  ;;  %v353_v15 = vshll.u32 %v317_v7, 16  ;;  %v358_v16 = vshrl.u32 %v1161_v8, 16  ;;  %v361_v17 = vshll.u32 %v1161_v8, 16  ;;  %v321_v26 = vld [vmem:[%s283_s10 + $0x1c] sm:$0x1] }
  0x1b   : > { %v332_v19 = vrot.slane %v330_v10, 4  ;;  %v335_v20 = vrot.slane %v333_v11, 5  ;;  %v346_v21 = vrot.slane %v344_v13, 4  ;;  %v341_v22 = vrot.slane %v339_v12, 5  ;;  %v323_v39 = vld [vmem:[%s300_s23 + $0x4] sm:$0x1] }
  0x1c   : > { %v349_v23 = vrot.slane %v347_v14, 5  ;;  %v360_v24 = vrot.slane %v358_v16, 4  ;;  %v363_v25 = vrot.slane %v361_v17, 5  ;;  %v367_v28 = vshll.u32 %v319_v9, 16  ;;  %v322_v42 = vld [vmem:[%s300_s23] sm:$0xf] }
  0x1d   : > { %v336_v27 = vor.u32 %v335_v20, %v332_v19  ;;  %v372_v29 = vshrl.u32 %v1171_v18, 16  ;;  %v375_v30 = vshll.u32 %v1171_v18, 16  ;;  %v355_v33 = vrot.slane %v353_v15, 5  ;;  %s1070_s28 = smov 120   ;;  %v678_v11 = vld [vmem:[%s1253_s2 + $0x10] sm:$0x3] }
  0x1e   : > { %v350_v32 = vor.u32 %v349_v23, %v346_v21  ;;  %v364_v34 = vor.u32 %v363_v25, %v360_v24  ;;  %v381_v35 = vshll.u32 %v321_v26, 16  ;;  %v369_v38 = vrot.slane %v367_v28, 5  ;;  %s887_s5 = sshll.u32 %s1270_s16, 3  ;;  %v909_v17 = vld [vmem:[%s1254_s3] ss:$0 sm:$0xff] }
  0x1f   : > { %v337_v37 = vrot.slane %v336_v27, 4  ;;  %v374_v43 = vrot.slane %v372_v29, 4  ;;  %v377_v44 = vrot.slane %v375_v30, 5  ;;  %v665_v47 = vshrl.u32 %v322_v42, 16  ;;  %s309_s6 = sadd.s32 %s887_s5, %s1274_s22 }
  0x20   : > { %v351_v40 = vrot.slane %v350_v32, 4  ;;  %v365_v41 = vrot.slane %v364_v34, 4  ;;  %v383_v46 = vrot.slane %v381_v35, 5  ;;  %v668_v48 = vshll.u32 %v322_v42, 16  ;;  %s888_s7 = sshll.u32 %s309_s6, 3 }
  0x21   : > { %v342_v45 = vsel %vm1179_vm3, %v337_v37, %v341_v22  ;;  %v378_v51 = vor.u32 %v377_v44, %v374_v43  ;;  %v674_v52 = vshll.u32 %v323_v39, 16  ;;  %v667_v56 = vrot.slane %v665_v47, 4  ;;  %s311_s12 = scalar_lea.vmem %s1255_s4, %s888_s7 }
  0x22   : > { %v356_v49 = vsel %vm1179_vm3, %v351_v40, %v355_v33  ;;  %v370_v50 = vsel %vm1179_vm3, %v365_v41, %v369_v38  ;;  %v670_v57 = vrot.slane %v668_v48, 5  ;;  %v901_v63 = vcombine.low %v1159_v6, %v1161_v8 }
  0x23   : > { %v889_v54 = vcombine.low %v342_v45, %v356_v49  ;;  %v905_v55 = vcombine.low %v356_v49, %v370_v50  ;;  %v379_v58 = vrot.slane %v378_v51, 4  ;;  %v676_v61 = vrot.slane %v674_v52, 5 }
  0x24   : > { %v671_v60 = vor.u32 %v670_v57, %v667_v56  ;;  %v902_v2 = vcombine.low %v1171_v18, %v322_v42  ;;  %v894_v10 = vcombine.low %v1161_v8, %v1171_v18  ;;  %v689_v8 = vsel %vm399_vm0, %v678_v11, 0 }
  0x25   : > { %525 = vrot.lane.b32.xlu0 %v889_v54, %s1070_s28  ;;  %935 = vmatprep.mubr.msk.bf16.mxu1 %vm392_vm4, %v889_v54  ;;  %v384_v0 = vsel %vm1179_vm3, %v379_v58, %v383_v46 }
  0x26   : > { %v890_v3 = vcombine.low %v370_v50, %v384_v0  ;;  %v672_v5 = vrot.slane %v671_v60, 4 }
  0x28   : > { %v677_v7 = vsel %vm1179_vm3, %v672_v5, %v676_v61  ;;  %936 = vmatmul.mubr.msk.bf16.vlgmr.msra.gmra.mrb[0].mxu1 %vm392_vm4, %v890_v3 }
  0x29   : > { %527 = vrot.lane.b32.xlu0 %v890_v3, %s1070_s28  ;;  %v906_v9 = vcombine.low %v384_v0, %v677_v7  ;;  %940 = vmatpush3.bf16.msra.mxu1 %v1026_v36 }
  0x2a   : > { %941 = vmatprep.mubr.msk.bf16.mxu1 %vm468_vm6, %v893_v1 }
  0x34   : > { %942 = vmatmul.mubr.msk.bf16.vlgmr.msra.gmra.mrb[0].mxu1 %vm468_vm6, %v894_v10 }
  0x97   : > { %v526_v4 = vpop.permute.xlu0 %525 }
  0x98   : > { %947 = vmatprep.mubr.msk.bf16.mxu0 %vm392_vm4, %v526_v4 }
  0x9b   : > { %v528_v6 = vpop.permute.xlu0 %527 }
  0x9c   : > { %948 = vmatmul.mubr.msk.bf16.vlgmr.msra.gmra.mrb[0].mxu0 %vm392_vm4, %v528_v6 }
  0x9d   : > { %952 = vmatpush3.bf16.msra.mxu0 %v609_v62  ;;  %953 = vmatprep.mubr.msk.bf16.mxu0 %vm600_vm7, %v901_v63 }
  0x9e   : > { %982 = vmatprep.subr.msk.bf16.mxu0 %vm399_vm0, %v678_v11 }
  0xa8   : > { %954 = vmatmul.mubr.msk.bf16.vlgmr.msra.gmra.mrb[0].mxu0 %vm600_vm7, %v902_v2 }
  0xa9   : > { %958 = vmatpush3.bf16.msra.mxu0 %v689_v8  ;;  %959 = vmatprep.mubr.msk.bf16.mxu0 %vm392_vm4, %v905_v55 }
  0xb4   : > { %960 = vmatmul.mubr.msk.bf16.vlgmr.msra.gmra.mrb[0].mxu0 %vm392_vm4, %v906_v9 }
 0x107   : > { %v943_v12 = vpop.f32.mrb[0].mxu1 }
 0x108   : > { %v509_v13 = vpop.f32.mrb[1].mxu1 }
 0x109   : > { %v944_v14 = vpop.f32.mrb[2].mxu1 }
 0x10a   : > { %v512_v15 = vpop.f32.mrb[3].mxu1 }
 0x187   : > { %v961_v16 = vpop.f32.mrb[0].mxu0 }
 0x188   : > { %v963_v18 = vadd.f32 %v961_v16, %v943_v12  ;;  %v725_v19 = vpop.f32.mrb[1].mxu0 }
 0x189   : > { %v964_v20 = vadd.f32 %v725_v19, %v509_v13  ;;  %v962_v21 = vpop.f32.mrb[2].mxu0 }
 0x18a   : > { %v753_v22 = vadd.f32 %v963_v18, %v909_v17  ;;  %v965_v23 = vadd.f32 %v962_v21, %v944_v14  ;;  %v728_v24 = vpop.f32.mrb[3].mxu0 }
 0x18b   : > { %v751_v25 = vadd.f32 %v964_v20, %v909_v17  ;;  %v966_v26 = vadd.f32 %v728_v24, %v512_v15 }
 0x18c   : > { %757 = vst.msk [vmem:[%s311_s12 + $0x10] sm:$0xff] %vm392_vm4, %v753_v22  ;;  %v754_v27 = vadd.f32 %v965_v23, %v909_v17 }
 0x18d   : > { %755 = vst.msk [vmem:[%s311_s12] sm:$0xff] %vm392_vm4, %v751_v25  ;;  %v752_v28 = vadd.f32 %v966_v26, %v909_v17 }
 0x18e   : > { %758 = vst.msk [vmem:[%s311_s12 + $0x18] sm:$0xff] %vm392_vm4, %v754_v27 }
 0x18f   : > { %756 = vst.msk [vmem:[%s311_s12 + $0x8] sm:$0xff] %vm392_vm4, %v752_v28 }
 0x190 PF: > { %s14_s19 = sadd.s32 1, %s1068_s19   ;;  %s1259_s15 = smov %s1060_s17 }
 0x191   : > { %p11_p9 = scmp.ge.s32.totalorder %s14_s19, 6   ;;  %s1260_s16 = smov %s1064_s18 }
 0x192   : > { %s1261_s17 = smov %s1264_s20  ;;  %s1262_s18 = smov %s1268_s21 }
 0x193   :  { %13 = sbr.rel (!%p11_p9) target bundleno = 3 (0x3), region = 69 }

</bundles_post_ra>
